<compile_context>
chip_gen: v7x
topology: tpu7x:2x2x1
jax: 0.10.0
libtpu: 0.0.40
codegen_flags: <defaults>
</compile_context>

<pallas_src>
import functools
import math

import jax
import jax.numpy as jnp
from jax import lax
from jax.experimental import pallas as pl
from jax.experimental.pallas import tpu as pltpu

_LANES = 128
_SUBLANES = 8
_NUM_STATS = 6            # sum_x, sum_y, sum_xx, sum_yy, sum_xy, sum_d2

_MSE_W = 0.7
_PEARSON_W = 0.3
_VAR_EPS = 1e-12

# ~2 MiB per (input, pipeline buffer) => 8 MiB total input buffering with
# double-buffering: inside the default scoped-VMEM limit on v5e/v6e/v7x.
_BYTES_PER_INPUT_BUFFER = 2 * 1024 * 1024


def _round_up(a, b):
    return (a + b - 1) // b * b


def _crit_moments_kernel(x_ref, y_ref, acc_ref, *, valid_rows, tm, ragged):
    """Accumulate raw moments of one (tm, 128) tile into (8, 128) vreg partials.

    acc_ref: (6, 8, 128) f32 output block, resident across the reduction axis.
    """
    i = pl.program_id(0)

    @pl.when(i == 0)
    def _init():
        acc_ref[...] = jnp.zeros_like(acc_ref)

    # Stream HBM in the source dtype (bf16 stays bf16); accumulate in f32.
    x = x_ref[...].astype(jnp.float32)
    y = y_ref[...].astype(jnp.float32)

    if ragged:  # static Python bool: only emitted when the last block is ragged
        # The last block hangs past the end of the (valid_rows, 128) slab and
        # Pallas leaves the out-of-bounds rows undefined -> zero them (exact:
        # zeros contribute nothing to any raw moment).
        rows = lax.broadcasted_iota(jnp.int32, (tm, _LANES), 0)
        valid = (i * tm + rows) < valid_rows
        x = jnp.where(valid, x, 0.0)
        y = jnp.where(valid, y, 0.0)

    d = x - y

    def vreg_partial(v):
        # Pure-VPU partial reduce (tm, 128) -> (8, 128): sum groups of 8
        # sublanes.  The expensive cross-lane (XLU) reduce is deferred to the
        # tiny O(1) epilogue outside the kernel.
        return jnp.sum(v.reshape(tm // _SUBLANES, _SUBLANES, _LANES), axis=0)

    acc_ref[0] += vreg_partial(x)
    acc_ref[1] += vreg_partial(y)
    acc_ref[2] += vreg_partial(x * x)
    acc_ref[3] += vreg_partial(y * y)
    acc_ref[4] += vreg_partial(x * y)
    # Keep MSE from (x - y)^2 directly (better precision than xx+yy-2xy when
    # x ~ y); only worth dropping if VALU is provably the binding slot.
    acc_ref[5] += vreg_partial(d * d)


def crit_pallas(x, y, *, tm=None):
    """0.7 * MSE(x, y) + 0.3 * (1 - pearson_corr(flatten(x), flatten(y)))."""
    assert x.shape == y.shape, (x.shape, y.shape)
    assert x.dtype == y.dtype, (x.dtype, y.dtype)
    total = math.prod(x.shape)
    itemsize = jnp.dtype(x.dtype).itemsize

    # Packed-sublane multiple: 8 rows for 4-byte, 16 for bf16, 32 for int8/fp8.
    sublane_mult = _SUBLANES * max(1, 4 // itemsize)

    m = -(-total // _LANES)                      # rows of the (m, 128) slab

    if tm is None:
        tm = _BYTES_PER_INPUT_BUFFER // (_LANES * itemsize)  # 4096 f32 / 8192 bf16
    tm = max(sublane_mult, tm - tm % sublane_mult)

    if m <= tm:
        # Tiny input: clamp to a single sublane-aligned block and zero-pad up
        # to it (negligible copy; zeros are exact for all raw moments).
        tm = _round_up(m, sublane_mult)
        m_arr = tm
    else:
        m_arr = m

    ragged = (m_arr % tm) != 0
    nb = -(-m_arr // tm)

    def prep(a):
        a = a.reshape(-1)                        # keep source dtype over HBM
        if m_arr * _LANES != total:
            # TODO(synk): only hit when numel % 128 != 0 (or tiny inputs); the
            # common 128-divisible case is a zero-copy reshape, no jnp.pad.
            a = jnp.pad(a, (0, m_arr * _LANES - total))
        return a.reshape(m_arr, _LANES)

    x2 = prep(x)
    y2 = prep(y)

    kernel = functools.partial(
        _crit_moments_kernel, valid_rows=m_arr, tm=tm, ragged=ragged)

    moments = pl.pallas_call(
        kernel,
        out_shape=jax.ShapeDtypeStruct(
            (_NUM_STATS, _SUBLANES, _LANES), jnp.float32),
        grid=(nb,),
        in_specs=[
            pl.BlockSpec((tm, _LANES), lambda i: (i, 0)),
            pl.BlockSpec((tm, _LANES), lambda i: (i, 0)),
        ],
        out_specs=pl.BlockSpec(
            (_NUM_STATS, _SUBLANES, _LANES), lambda i: (0, 0, 0)),
        compiler_params=pltpu.CompilerParams(
            dimension_semantics=("arbitrary",)),
        cost_estimate=pl.CostEstimate(
            flops=12 * total,
            transcendentals=0,
            bytes_accessed=2 * m_arr * _LANES * itemsize
            + _NUM_STATS * _SUBLANES * _LANES * 4),
    )(x2, y2)

    # Tiny O(1) epilogue: cross-lane reduce the vreg partials and form the loss.
    s = jnp.sum(moments, axis=(1, 2))            # (6,)
    sum_x, sum_y, sum_xx, sum_yy, sum_xy, sum_d2 = (
        s[k] for k in range(_NUM_STATS))
    inv_n = 1.0 / float(total)                   # exact f64 trace-time constant

    mse = sum_d2 * inv_n
    # NOTE: one-pass raw-moment cov/var loses precision when |mean| >> spread;
    # clamp variances so constant inputs / cancellation can't produce NaN.
    cov = sum_xy - sum_x * sum_y * inv_n
    var_x = jnp.maximum(sum_xx - sum_x * sum_x * inv_n, _VAR_EPS)
    var_y = jnp.maximum(sum_yy - sum_y * sum_y * inv_n, _VAR_EPS)
    pearson = cov * lax.rsqrt(var_x) * lax.rsqrt(var_y)
    return _MSE_W * mse + _PEARSON_W * (1.0 - pearson)


def crit_ref(x, y):
    x = x.astype(jnp.float32)
    y = y.astype(jnp.float32)
    mse = jnp.mean((x - y) ** 2)
    vx = x - jnp.mean(x)
    vy = y - jnp.mean(y)
    corr = jnp.sum(vx * vy) / (
        jnp.sqrt(jnp.sum(vx * vx)) * jnp.sqrt(jnp.sum(vy * vy)))
    return _MSE_W * mse + _PEARSON_W * (1.0 - corr)


if __name__ == "__main__":
    key = jax.random.PRNGKey(0)
    kx, ky = jax.random.split(key)

    # 1) NCHW prediction/target, f32 (numel % 128 == 0 -> zero-copy path).
    x = jax.random.normal(kx, (2, 4, 16, 16), dtype=jnp.float32)
    y = jax.random.normal(ky, (2, 4, 16, 16), dtype=jnp.float32)
    out = jax.block_until_ready(crit_pallas(x, y))
    ref = jax.block_until_ready(crit_ref(x, y))
    assert jnp.isfinite(out), out
    assert abs(float(out) - float(ref)) < 1e-4, (float(out), float(ref))

    # 2) Ragged last block (m=24 rows, tm=16) exercises the in-kernel tail mask.
    x3 = jax.random.normal(kx, (3, 4, 16, 16), dtype=jnp.float32)
    y3 = jax.random.normal(ky, (3, 4, 16, 16), dtype=jnp.float32)
    out3 = jax.block_until_ready(crit_pallas(x3, y3, tm=16))
    ref3 = jax.block_until_ready(crit_ref(x3, y3))
    assert abs(float(out3) - float(ref3)) < 1e-4, (float(out3), float(ref3))

    # 3) bf16 inputs stream as bf16 over HBM; accumulation stays f32 in-kernel.
    xb = x.astype(jnp.bfloat16)
    yb = y.astype(jnp.bfloat16)
    outb = jax.block_until_ready(crit_pallas(xb, yb))
    refb = jax.block_until_ready(crit_ref(xb, yb))
    assert abs(float(outb) - float(refb)) < 1e-3, (float(outb), float(refb))

    print("KERNEL_OK")
</pallas_src>

<mosaic_0001>
module attributes {stable_mosaic.version = 11 : i64} {
  func.func @_crit_moments_kernel(%arg0: i32, %arg1: memref<16x128xf32, #tpu.memory_space<vmem>>, %arg2: memref<16x128xf32, #tpu.memory_space<vmem>>, %arg3: memref<6x8x128xf32, #tpu.memory_space<vmem>>) attributes {dimension_semantics = [#tpu.dimension_semantics<arbitrary>], iteration_bounds = array<i64: 1>, scalar_prefetch = 0 : i64, scratch_operands = 0 : i64, tpu.core_type = #tpu.core_type<tc>, window_params = [{transform_indices = @transform_0, window_bounds = array<i64: 16, 128>}, {transform_indices = @transform_1, window_bounds = array<i64: 16, 128>}, {pipeline_mode = #tpu.pipeline_mode<synchronous>, transform_indices = @transform_2, window_bounds = array<i64: 6, 8, 128>}]} {
    %c0_i32 = arith.constant 0 : i32
    %0 = arith.cmpi eq, %arg0, %c0_i32 : i32
    %1 = arith.extui %0 : i1 to i32
    %c0_i32_0 = arith.constant 0 : i32
    %2 = arith.cmpi ne, %1, %c0_i32_0 : i32
    scf.if %2 {
      %cst_40 = arith.constant 0.000000e+00 : f32
      %58 = vector.broadcast %cst_40 : f32 to vector<6x8x128xf32>
      %c0_41 = arith.constant 0 : index
      %c0_42 = arith.constant 0 : index
      %c0_43 = arith.constant 0 : index
      %59 = vector.load %arg3[%c0_41, %c0_42, %c0_43] : memref<6x8x128xf32, #tpu.memory_space<vmem>>, vector<6x8x128xf32>
      tpu.vector_store %arg3[%c0_41, %c0_42, %c0_43], %58 {strides = array<i32>} : memref<6x8x128xf32, #tpu.memory_space<vmem>>, vector<6x8x128xf32>,
    } else {
    }
    %c0 = arith.constant 0 : index
    %c0_1 = arith.constant 0 : index
    %3 = vector.load %arg1[%c0, %c0_1] : memref<16x128xf32, #tpu.memory_space<vmem>>, vector<16x128xf32>
    %c0_2 = arith.constant 0 : index
    %c0_3 = arith.constant 0 : index
    %4 = vector.load %arg2[%c0_2, %c0_3] : memref<16x128xf32, #tpu.memory_space<vmem>>, vector<16x128xf32>
    %5 = arith.subf %3, %4 : vector<16x128xf32>
    %c0_4 = arith.constant 0 : index
    %c0_5 = arith.constant 0 : index
    %c0_6 = arith.constant 0 : index
    %6 = vector.load %arg3[%c0_4, %c0_5, %c0_6] : memref<6x8x128xf32, #tpu.memory_space<vmem>>, vector<1x8x128xf32>
    %7 = vector.shape_cast %6 : vector<1x8x128xf32> to vector<8x128xf32>
    %8 = vector.shape_cast %3 : vector<16x128xf32> to vector<2x8x128xf32>
    %cst = arith.constant dense<0.000000e+00> : vector<8x128xf32>
    %9 = vector.multi_reduction <add>, %8, %cst [0] : vector<2x8x128xf32> to vector<8x128xf32>
    %10 = arith.addf %7, %9 : vector<8x128xf32>
    %c0_7 = arith.constant 0 : index
    %c0_8 = arith.constant 0 : index
    %c0_9 = arith.constant 0 : index
    %11 = vector.load %arg3[%c0_7, %c0_8, %c0_9] : memref<6x8x128xf32, #tpu.memory_space<vmem>>, vector<1x8x128xf32>
    %12 = vector.shape_cast %11 : vector<1x8x128xf32> to vector<8x128xf32>
    %13 = vector.shape_cast %10 : vector<8x128xf32> to vector<1x8x128xf32>
    tpu.vector_store %arg3[%c0_7, %c0_8, %c0_9], %13 {strides = array<i32>} : memref<6x8x128xf32, #tpu.memory_space<vmem>>, vector<1x8x128xf32>,
    %c1 = arith.constant 1 : index
    %c0_10 = arith.constant 0 : index
    %c0_11 = arith.constant 0 : index
    %14 = vector.load %arg3[%c1, %c0_10, %c0_11] : memref<6x8x128xf32, #tpu.memory_space<vmem>>, vector<1x8x128xf32>
    %15 = vector.shape_cast %14 : vector<1x8x128xf32> to vector<8x128xf32>
    %16 = vector.shape_cast %4 : vector<16x128xf32> to vector<2x8x128xf32>
    %cst_12 = arith.constant dense<0.000000e+00> : vector<8x128xf32>
    %17 = vector.multi_reduction <add>, %16, %cst_12 [0] : vector<2x8x128xf32> to vector<8x128xf32>
    %18 = arith.addf %15, %17 : vector<8x128xf32>
    %c1_13 = arith.constant 1 : index
    %c0_14 = arith.constant 0 : index
    %c0_15 = arith.constant 0 : index
    %19 = vector.load %arg3[%c1_13, %c0_14, %c0_15] : memref<6x8x128xf32, #tpu.memory_space<vmem>>, vector<1x8x128xf32>
    %20 = vector.shape_cast %19 : vector<1x8x128xf32> to vector<8x128xf32>
    %21 = vector.shape_cast %18 : vector<8x128xf32> to vector<1x8x128xf32>
    tpu.vector_store %arg3[%c1_13, %c0_14, %c0_15], %21 {strides = array<i32>} : memref<6x8x128xf32, #tpu.memory_space<vmem>>, vector<1x8x128xf32>,
    %c2 = arith.constant 2 : index
    %c0_16 = arith.constant 0 : index
    %c0_17 = arith.constant 0 : index
    %22 = vector.load %arg3[%c2, %c0_16, %c0_17] : memref<6x8x128xf32, #tpu.memory_space<vmem>>, vector<1x8x128xf32>
    %23 = vector.shape_cast %22 : vector<1x8x128xf32> to vector<8x128xf32>
    %24 = arith.mulf %3, %3 : vector<16x128xf32>
    %25 = vector.shape_cast %24 : vector<16x128xf32> to vector<2x8x128xf32>
    %cst_18 = arith.constant dense<0.000000e+00> : vector<8x128xf32>
    %26 = vector.multi_reduction <add>, %25, %cst_18 [0] : vector<2x8x128xf32> to vector<8x128xf32>
    %27 = arith.addf %23, %26 : vector<8x128xf32>
    %c2_19 = arith.constant 2 : index
    %c0_20 = arith.constant 0 : index
    %c0_21 = arith.constant 0 : index
    %28 = vector.load %arg3[%c2_19, %c0_20, %c0_21] : memref<6x8x128xf32, #tpu.memory_space<vmem>>, vector<1x8x128xf32>
    %29 = vector.shape_cast %28 : vector<1x8x128xf32> to vector<8x128xf32>
    %30 = vector.shape_cast %27 : vector<8x128xf32> to vector<1x8x128xf32>
    tpu.vector_store %arg3[%c2_19, %c0_20, %c0_21], %30 {strides = array<i32>} : memref<6x8x128xf32, #tpu.memory_space<vmem>>, vector<1x8x128xf32>,
    %c3 = arith.constant 3 : index
    %c0_22 = arith.constant 0 : index
    %c0_23 = arith.constant 0 : index
    %31 = vector.load %arg3[%c3, %c0_22, %c0_23] : memref<6x8x128xf32, #tpu.memory_space<vmem>>, vector<1x8x128xf32>
    %32 = vector.shape_cast %31 : vector<1x8x128xf32> to vector<8x128xf32>
    %33 = arith.mulf %4, %4 : vector<16x128xf32>
    %34 = vector.shape_cast %33 : vector<16x128xf32> to vector<2x8x128xf32>
    %cst_24 = arith.constant dense<0.000000e+00> : vector<8x128xf32>
    %35 = vector.multi_reduction <add>, %34, %cst_24 [0] : vector<2x8x128xf32> to vector<8x128xf32>
    %36 = arith.addf %32, %35 : vector<8x128xf32>
    %c3_25 = arith.constant 3 : index
    %c0_26 = arith.constant 0 : index
    %c0_27 = arith.constant 0 : index
    %37 = vector.load %arg3[%c3_25, %c0_26, %c0_27] : memref<6x8x128xf32, #tpu.memory_space<vmem>>, vector<1x8x128xf32>
    %38 = vector.shape_cast %37 : vector<1x8x128xf32> to vector<8x128xf32>
    %39 = vector.shape_cast %36 : vector<8x128xf32> to vector<1x8x128xf32>
    tpu.vector_store %arg3[%c3_25, %c0_26, %c0_27], %39 {strides = array<i32>} : memref<6x8x128xf32, #tpu.memory_space<vmem>>, vector<1x8x128xf32>,
    %c4 = arith.constant 4 : index
    %c0_28 = arith.constant 0 : index
    %c0_29 = arith.constant 0 : index
    %40 = vector.load %arg3[%c4, %c0_28, %c0_29] : memref<6x8x128xf32, #tpu.memory_space<vmem>>, vector<1x8x128xf32>
    %41 = vector.shape_cast %40 : vector<1x8x128xf32> to vector<8x128xf32>
    %42 = arith.mulf %3, %4 : vector<16x128xf32>
    %43 = vector.shape_cast %42 : vector<16x128xf32> to vector<2x8x128xf32>
    %cst_30 = arith.constant dense<0.000000e+00> : vector<8x128xf32>
    %44 = vector.multi_reduction <add>, %43, %cst_30 [0] : vector<2x8x128xf32> to vector<8x128xf32>
    %45 = arith.addf %41, %44 : vector<8x128xf32>
    %c4_31 = arith.constant 4 : index
    %c0_32 = arith.constant 0 : index
    %c0_33 = arith.constant 0 : index
    %46 = vector.load %arg3[%c4_31, %c0_32, %c0_33] : memref<6x8x128xf32, #tpu.memory_space<vmem>>, vector<1x8x128xf32>
    %47 = vector.shape_cast %46 : vector<1x8x128xf32> to vector<8x128xf32>
    %48 = vector.shape_cast %45 : vector<8x128xf32> to vector<1x8x128xf32>
    tpu.vector_store %arg3[%c4_31, %c0_32, %c0_33], %48 {strides = array<i32>} : memref<6x8x128xf32, #tpu.memory_space<vmem>>, vector<1x8x128xf32>,
    %c5 = arith.constant 5 : index
    %c0_34 = arith.constant 0 : index
    %c0_35 = arith.constant 0 : index
    %49 = vector.load %arg3[%c5, %c0_34, %c0_35] : memref<6x8x128xf32, #tpu.memory_space<vmem>>, vector<1x8x128xf32>
    %50 = vector.shape_cast %49 : vector<1x8x128xf32> to vector<8x128xf32>
    %51 = arith.mulf %5, %5 : vector<16x128xf32>
    %52 = vector.shape_cast %51 : vector<16x128xf32> to vector<2x8x128xf32>
    %cst_36 = arith.constant dense<0.000000e+00> : vector<8x128xf32>
    %53 = vector.multi_reduction <add>, %52, %cst_36 [0] : vector<2x8x128xf32> to vector<8x128xf32>
    %54 = arith.addf %50, %53 : vector<8x128xf32>
    %c5_37 = arith.constant 5 : index
    %c0_38 = arith.constant 0 : index
    %c0_39 = arith.constant 0 : index
    %55 = vector.load %arg3[%c5_37, %c0_38, %c0_39] : memref<6x8x128xf32, #tpu.memory_space<vmem>>, vector<1x8x128xf32>
    %56 = vector.shape_cast %55 : vector<1x8x128xf32> to vector<8x128xf32>
    %57 = vector.shape_cast %54 : vector<8x128xf32> to vector<1x8x128xf32>
    tpu.vector_store %arg3[%c5_37, %c0_38, %c0_39], %57 {strides = array<i32>} : memref<6x8x128xf32, #tpu.memory_space<vmem>>, vector<1x8x128xf32>,
    return
  }
  func.func @transform_0(%arg0: i32) -> (i32, i32) {
    %c0_i32 = arith.constant 0 : i32
    %c0_i32_0 = arith.constant 0 : i32
    return %arg0, %c0_i32 : i32, i32
  }
  func.func @transform_1(%arg0: i32) -> (i32, i32) {
    %c0_i32 = arith.constant 0 : i32
    %c0_i32_0 = arith.constant 0 : i32
    return %arg0, %c0_i32 : i32, i32
  }
  func.func @transform_2(%arg0: i32) -> (i32, i32, i32) {
    %c0_i32 = arith.constant 0 : i32
    %c0_i32_0 = arith.constant 0 : i32
    %c0_i32_1 = arith.constant 0 : i32
    %c0_i32_2 = arith.constant 0 : i32
    return %c0_i32, %c0_i32_0, %c0_i32_1 : i32, i32, i32
  }
}

</mosaic_0001>

<bundles_post_ra>
// kernel: tpu_custom_call.1
= control target key start
LH: loop header
LB: loop body
LE: loop exit
PB: predicated region body
PF: predicated region fallthrough
CT: control target
= control target key end

     0   :  { %7 = vsyncpa [#allocation3], 0  ;;  %s254_s0 = inlined_call_operand.hbm [shape: f32[16,128], index: 0, kind: input, shape index: {}]   ;;  %s255_s1 = inlined_call_operand.hbm [shape: f32[16,128], index: 1, kind: input, shape index: {}]   ;;  %s256_s2 = inlined_call_operand.hbm [shape: f32[6,8,128], index: 2, kind: output, shape index: {}]  }
   0x1   :  { %8 = vsyncpa [#allocation6], 0 }
   0x2   :  { %9 = vsyncpa [#allocation4], 0  ;;  %s189_s9 = smov [#allocation2]   ;;  %s117_s13 = scalar_lea.hbm %s254_s0, 256 }
   0x3   :  { %s15_s10 = sshll.u32 %s189_s9, 4  ;;  %p118_p0 = scmp.ne.s32.totalorder %s254_s0, %s117_s13  ;;  %s16_s10 = int_to_ptr.vmem [resolvable:$true] %s15_s10 }
   0x4   :  { %p121_p1 = scmp.lt.u32.totalorder %s117_s13, %s254_s0 }
   0x6   :  { %p123_p2 = pnand %p121_p1, %p118_p0 }
   0x8   :  { %126 = shalt.err (!%p123_p2)
}
   0x9   :  { %s127_s18 = scalar_lea.vmem %s16_s10, 256  ;;  %p132_p4 = scmp.lt.s32.totalorder %s16_s10, %s16_s10 }
   0xa   :  { %p128_p3 = scmp.ne.s32.totalorder %s16_s10, %s127_s18  ;;  %p133_p5 = scmp.lt.s32.totalorder %s127_s18, %s127_s18 }
   0xc   :  { %p134_p6 = por %p133_p5, %p132_p4 }
   0xe   :  { %p135_p7 = pnand %p134_p6, %p128_p3 }
  0x10   :  { %138 = shalt.err (!%p135_p7)
}
  0x11   :  { %s190_s19 = smov 128   ;;  %s191_s20 = smov 8  }
  0x12   :  { %21 = dma.hbm_to_vmem [thread:$0]  %s254_s0, 256, %s16_s10, [#allocation3], %s190_s19, %s190_s19, %s191_s20  }
  0x13   :  { %s192_s23 = smov [#allocation5]   ;;  %s139_s27 = scalar_lea.hbm %s255_s1, 256 }
  0x14   :  { %s27_s24 = sshll.u32 %s192_s23, 4  ;;  %p140_p8 = scmp.ne.s32.totalorder %s255_s1, %s139_s27  ;;  %s28_s24 = int_to_ptr.vmem [resolvable:$true] %s27_s24 }
  0x15   :  { %p143_p9 = scmp.lt.u32.totalorder %s139_s27, %s255_s1 }
  0x17   :  { %p145_p10 = pnand %p143_p9, %p140_p8 }
  0x19   :  { %148 = shalt.err (!%p145_p10)
}
  0x1a   :  { %s149_s4 = scalar_lea.vmem %s28_s24, 256  ;;  %p154_p12 = scmp.lt.s32.totalorder %s28_s24, %s28_s24 }
  0x1b   :  { %p150_p11 = scmp.ne.s32.totalorder %s28_s24, %s149_s4  ;;  %p155_p13 = scmp.lt.s32.totalorder %s149_s4, %s149_s4 }
  0x1d   :  { %p156_p0 = por %p155_p13, %p154_p12 }
  0x1f   :  { %p157_p1 = pnand %p156_p0, %p150_p11 }
  0x21   :  { %160 = shalt.err (!%p157_p1)
}
  0x22   :  { %33 = dma.hbm_to_vmem [thread:$0]  %s255_s1, 256, %s28_s24, [#allocation6], %s190_s19, %s190_s19, %s191_s20  }
  0x23   :  { %183 = dma.done.wait [#allocation3], 256  }
  0x24   :  { %184 = vsyncadd [#allocation3], 4294967040 }
  0x25   :  { %185 = dma.done.wait [#allocation6], 256  }
  0x26   :  { %186 = vsyncadd [#allocation6], 4294967040  ;;  %v50_v0 = vld [vmem:[#allocation2] sm:$0xff]  ;;  %v51_v1 = vld [vmem:[#allocation2 + $0x8] sm:$0xff]  ;;  %s193_s1 = smov [#allocation7]  }
  0x27   :  { %v52_v2 = vld [vmem:[#allocation5] sm:$0xff]  ;;  %v57_v3 = vadd.f32 %v51_v1, %v50_v0  ;;  %v53_v4 = vld [vmem:[#allocation5 + $0x8] sm:$0xff]  ;;  %v67_v5 = vmul.f32 %v50_v0, %v50_v0  ;;  %v68_v6 = vmul.f32 %v51_v1, %v51_v1  ;;  %s98_s6 = sshll.u32 %s193_s1, 4  ;;  %s99_s6 = int_to_ptr.vmem [resolvable:$true] %s98_s6 }
  0x28   :  { %v74_v7 = vmul.f32 %v52_v2, %v52_v2  ;;  %v62_v8 = vadd.f32 %v53_v4, %v52_v2  ;;  %v75_v9 = vmul.f32 %v53_v4, %v53_v4  ;;  %v81_v10 = vmul.f32 %v52_v2, %v50_v0  ;;  %s161_s7 = scalar_lea.vmem %s99_s6, 768  ;;  %p166_p3 = scmp.lt.s32.totalorder %s99_s6, %s99_s6 }
  0x29   :  { %v82_v11 = vmul.f32 %v53_v4, %v51_v1  ;;  %v69_v12 = vadd.f32 %v68_v6, %v67_v5  ;;  %v54_v13 = vsub.f32 %v50_v0, %v52_v2  ;;  %v55_v14 = vsub.f32 %v51_v1, %v53_v4  ;;  %59 = vst [vmem:[#allocation7] sm:$0xff] %v57_v3  ;;  %p162_p2 = scmp.ne.s32.totalorder %s99_s6, %s161_s7  ;;  %p167_p4 = scmp.lt.s32.totalorder %s161_s7, %s161_s7 }
  0x2a   :  { %v76_v15 = vadd.f32 %v75_v9, %v74_v7  ;;  %64 = vst [vmem:[#allocation7 + $0x8] sm:$0xff] %v62_v8 }
  0x2b   :  { %v83_v16 = vadd.f32 %v82_v11, %v81_v10  ;;  %v88_v17 = vmul.f32 %v54_v13, %v54_v13  ;;  %v89_v18 = vmul.f32 %v55_v14, %v55_v14  ;;  %71 = vst [vmem:[#allocation7 + $0x10] sm:$0xff] %v69_v12  ;;  %p168_p5 = por %p167_p4, %p166_p3 }
  0x2c   :  { %78 = vst [vmem:[#allocation7 + $0x18] sm:$0xff] %v76_v15 }
  0x2d   :  { %v90_v19 = vadd.f32 %v89_v18, %v88_v17  ;;  %85 = vst [vmem:[#allocation7 + $0x20] sm:$0xff] %v83_v16  ;;  %p169_p6 = pnand %p168_p5, %p162_p2 }
  0x2f   :  { %92 = vst [vmem:[#allocation7 + $0x28] sm:$0xff] %v90_v19 }
  0x30   :  { %172 = shalt.err (!%p169_p6)
}
  0x31   :  { %s173_s10 = scalar_lea.hbm %s256_s2, 768 }
  0x32   :  { %p174_p7 = scmp.ne.s32.totalorder %s256_s2, %s173_s10  ;;  %p177_p8 = scmp.lt.u32.totalorder %s173_s10, %s256_s2 }
  0x34   :  { %p179_p9 = pnand %p177_p8, %p174_p7 }
  0x36   :  { %182 = shalt.err (!%p179_p9)
}
  0x37   :  { %104 = dma.vmem_to_hbm [thread:$0]  %s99_s6, 768, %s256_s2, [#allocation4], %s190_s19, %s190_s19, %s191_s20  }
  0x38   :  { %187 = dma.done.wait [#allocation4], 768  }
  0x39   :  { %188 = vsyncadd [#allocation4], 4294966528 }
  0x3a   :  { %108 = vsyncpa [#allocation3], 1 }
  0x3b   :  { %109 = vsyncpa [#allocation6], 1 }
  0x3c   :  { %110 = vsyncpa [#allocation4], 1 }

</bundles_post_ra>
